<compile_context>
chip_gen: v7x
topology: tpu7x:2x2x1
jax: 0.10.0
libtpu: 0.0.40
codegen_flags: <defaults>
</compile_context>

<pallas_src>
import functools

import jax
import jax.numpy as jnp
from jax.experimental import pallas as pl
from jax.experimental.pallas import tpu as pltpu


def _round_up(x, m):
    return ((x + m - 1) // m) * m


def _single_q_kernel(x_ref, w0_ref, b0_ref, *rest, n_mid, has_last,
                     use_tanh, gamma):
    """Fused MLP forward for one batch tile.

    `rest` layout:
      has_last, n_mid > 0 : (w_mid_ref, b_mid_ref, w_last_ref, b_last_ref, out_ref)
      has_last, n_mid == 0: (w_last_ref, b_last_ref, out_ref)
      not has_last        : (out_ref,)
    """
    w_mid_ref = b_mid_ref = w_last_ref = b_last_ref = None
    if has_last:
        if n_mid > 0:
            w_mid_ref, b_mid_ref, w_last_ref, b_last_ref, out_ref = rest
        else:
            w_last_ref, b_last_ref, out_ref = rest
    else:
        (out_ref,) = rest

    # Layer 0: input is already concat(obs, action) in bf16 (done in wrapper).
    h = jnp.dot(x_ref[...], w0_ref[...],
                preferred_element_type=jnp.float32) + b0_ref[...]

    if has_last:
        h = jnp.maximum(h, 0.0)
        for j in range(n_mid):                       # small count -> unrolled
            h = jnp.dot(h.astype(jnp.bfloat16), w_mid_ref[j],
                        preferred_element_type=jnp.float32) + b_mid_ref[j]
            h = jnp.maximum(h, 0.0)
        # Output layer: true N = 1, padded only to one lane-dense 128-column
        # block (real Q value lives in column 0).
        h = jnp.dot(h.astype(jnp.bfloat16), w_last_ref[...],
                    preferred_element_type=jnp.float32) + b_last_ref[...]

    if use_tanh:
        h = jnp.tanh(h) * (1.0 / (1.0 - gamma))
    out_ref[...] = h.astype(out_ref.dtype)


class SingleQCriticPallas:
    """Pallas port of idil/baselines/IQLearn SingleQCritic forward pass."""

    OUT_P = 128                        # lane-dense padded output width
    _VMEM_BUDGET = 48 * 1024 * 1024    # stay under v7x's 64 MiB physical VMEM

    def __init__(self, obs_dim, action_dim, list_hidden_dims, gamma=0.99,
                 use_tanh=False, key=None, max_tile_b=1024):
        self.obs_dim = int(obs_dim)
        self.action_dim = int(action_dim)
        self.k = self.obs_dim + self.action_dim
        self.gamma = float(gamma)
        self.use_tanh = bool(use_tanh)
        self.max_tile_b = int(max_tile_b)

        dims = [self.k] + list(list_hidden_dims) + [1]
        self.dims = dims
        self.n_layers = len(dims) - 1
        self.has_last = self.n_layers >= 2        # output layer separate from layer 0
        self.n_mid = max(self.n_layers - 2, 0)    # hidden layers after layer 0

        # Lane-aligned padded width of all hidden activations.
        if self.has_last:
            self.p = _round_up(max(list_hidden_dims), 128)
        else:
            self.p = self.OUT_P

        # Deterministic parameter init (the PyTorch module uses orthogonal
        # weight_init + zero bias; here we just need deterministic params).
        if key is None:
            key = jax.random.PRNGKey(0)
        ws, bs = [], []
        for i in range(self.n_layers):
            key, kw = jax.random.split(key)
            w = (jax.random.normal(kw, (dims[i], dims[i + 1]), jnp.float32)
                 * jnp.sqrt(2.0 / dims[i]))
            ws.append(w)
            bs.append(jnp.zeros((1, dims[i + 1]), jnp.float32))
        self.ws_f32, self.bs_f32 = ws, bs          # kept for the reference

        # --- packed, zero-padded kernel parameters (bf16 weights, f32 bias) ---
        P = self.p
        h1 = dims[1]
        w0_width = P if self.has_last else self.OUT_P
        w0 = jnp.zeros((self.k, w0_width), jnp.float32).at[:, :h1].set(ws[0])
        b0 = jnp.zeros((1, w0_width), jnp.float32).at[:, :h1].set(bs[0])
        self.w0 = w0.astype(jnp.bfloat16)
        self.b0 = b0

        if self.n_mid > 0:
            w_mid = jnp.zeros((self.n_mid, P, P), jnp.float32)
            b_mid = jnp.zeros((self.n_mid, 1, P), jnp.float32)
            for j in range(self.n_mid):
                w, b = ws[j + 1], bs[j + 1]
                w_mid = w_mid.at[j, :w.shape[0], :w.shape[1]].set(w)
                b_mid = b_mid.at[j, :, :b.shape[1]].set(b)
            self.w_mid = w_mid.astype(jnp.bfloat16)
            self.b_mid = b_mid
        else:
            self.w_mid = self.b_mid = None

        if self.has_last:
            wl, bl = ws[-1], bs[-1]
            w_last = jnp.zeros((P, self.OUT_P), jnp.float32)
            w_last = w_last.at[:wl.shape[0], :1].set(wl)
            b_last = jnp.zeros((1, self.OUT_P), jnp.float32).at[:, :1].set(bl)
            self.w_last = w_last.astype(jnp.bfloat16)
            self.b_last = b_last
        else:
            self.w_last = self.b_last = None

        # Total parameter VMEM footprint (bf16 weights + f32 biases).
        wb = self.w0.size * 2 + self.b0.size * 4
        if self.n_mid > 0:
            wb += self.w_mid.size * 2 + self.b_mid.size * 4
        if self.has_last:
            wb += self.w_last.size * 2 + self.b_last.size * 4
        self._weight_bytes = int(wb)
        # Single-buffer the constant-index weight operands only when it buys
        # meaningful VMEM (irrelevant for small hidden dims like 32/128).
        self._single_buffer_weights = self._weight_bytes >= (2 << 20)

    # -------------------------------------------------------------- helpers --
    def _param_spec(self, shape):
        ndim = len(shape)
        index_map = lambda i, _n=ndim: (0,) * _n    # constant -> VMEM-resident
        if self._single_buffer_weights:
            try:
                # Index never changes -> a second pipeline buffer is pure waste.
                return pl.BlockSpec(shape, index_map,
                                    pipeline_mode=pl.Buffered(1))
            except TypeError:   # older jax without pipeline_mode on BlockSpec
                pass
        return pl.BlockSpec(shape, index_map)

    def _vmem_estimate(self, tile_b):
        wbuf = 1 if self._single_buffer_weights else 2
        io = 2 * tile_b * self.k * 2 + 2 * tile_b * self.OUT_P * 4  # dbl-buffered I/O
        act = 4 * tile_b * self.p * 4                               # f32 intermediates
        return self._weight_bytes * wbuf + io + act

    # -------------------------------------------------------------- forward --
    def __call__(self, obs, action, both=False):
        # SingleQCritic.forward accepts `both` but ignores it.
        del both
        assert obs.shape[0] == action.shape[0]
        B = obs.shape[0]

        # Concat + bf16 cast in the wrapper: one input operand, half the DMA
        # bytes, and a single layer-1 matmul in the kernel.
        x = jnp.concatenate(
            [obs.astype(jnp.bfloat16), action.astype(jnp.bfloat16)], axis=-1)

        # tile_b: multiple of 16 (bf16 sublanes), capped by max_tile_b and the
        # VMEM budget, chosen so grid >= 2 when B allows it (v7x has 2 TCs and
        # the batch axis is "parallel").
        tile_b = min(self.max_tile_b, max(pl.cdiv(B, 2), 16))
        tile_b = _round_up(tile_b, 16)
        while tile_b > 256 and self._vmem_estimate(tile_b) > self._VMEM_BUDGET:
            tile_b = max(256, _round_up(tile_b // 2, 16))
        assert tile_b >= 16 and tile_b % 16 == 0, tile_b

        grid = pl.cdiv(B, tile_b)
        b_pad = grid * tile_b
        if b_pad != B:
            x = jnp.pad(x, ((0, b_pad - B), (0, 0)))

        kernel = functools.partial(
            _single_q_kernel, n_mid=self.n_mid, has_last=self.has_last,
            use_tanh=self.use_tanh, gamma=self.gamma)

        in_specs = [pl.BlockSpec((tile_b, self.k), lambda i: (i, 0)),
                    self._param_spec(self.w0.shape),
                    self._param_spec(self.b0.shape)]
        args = [x, self.w0, self.b0]
        if self.n_mid > 0:
            in_specs += [self._param_spec(self.w_mid.shape),
                         self._param_spec(self.b_mid.shape)]
            args += [self.w_mid, self.b_mid]
        if self.has_last:
            in_specs += [self._param_spec(self.w_last.shape),
                         self._param_spec(self.b_last.shape)]
            args += [self.w_last, self.b_last]

        # Advisory cost estimate (padded sizes).
        flops = 2 * b_pad * (self.k * self.w0.shape[1]
                             + self.n_mid * self.p * self.p
                             + (self.p * self.OUT_P if self.has_last else 0))
        transc = b_pad * self.OUT_P if self.use_tanh else 0
        bytes_accessed = (x.size * 2 + self._weight_bytes
                          + b_pad * self.OUT_P * 4)
        cost = pl.CostEstimate(flops=int(flops), transcendentals=int(transc),
                               bytes_accessed=int(bytes_accessed))

        cp_kwargs = dict(dimension_semantics=("parallel",))
        est = self._vmem_estimate(tile_b)
        if est > 32 * 1024 * 1024:
            cp_kwargs["vmem_limit_bytes"] = int(min(est, 128 * 1024 * 1024))

        out = pl.pallas_call(
            kernel,
            out_shape=jax.ShapeDtypeStruct((b_pad, self.OUT_P), jnp.float32),
            grid=(grid,),
            in_specs=in_specs,
            out_specs=pl.BlockSpec((tile_b, self.OUT_P), lambda i: (i, 0)),
            compiler_params=pltpu.CompilerParams(**cp_kwargs),
            cost_estimate=cost,
        )(*args)

        # Real Q lives in column 0 of the lane-dense output block.
        return out[:B, 0:1]


# ------------- pure-JAX reference (emulating bf16 matmul operands) -------------
def _reference_forward(critic, obs, action):
    def rnd(a):  # emulate the kernel's bf16 rounding of matmul operands
        return a.astype(jnp.bfloat16).astype(jnp.float32)

    h = jnp.concatenate([obs, action], axis=-1).astype(jnp.float32)
    for i in range(critic.n_layers):
        h = rnd(h) @ rnd(critic.ws_f32[i]) + critic.bs_f32[i]
        if i < critic.n_layers - 1:
            h = jnp.maximum(h, 0.0)
    if critic.use_tanh:
        h = jnp.tanh(h) * (1.0 / (1.0 - critic.gamma))
    return h


if __name__ == "__main__":
    key = jax.random.PRNGKey(0)
    k_obs, k_act, k_params, k_obs2, k_act2 = jax.random.split(key, 5)

    batch, obs_dim, action_dim = 2, 8, 4
    hidden_dims = (32, 32)

    obs = jax.random.normal(k_obs, (batch, obs_dim), jnp.float32)
    action = jax.random.normal(k_act, (batch, action_dim), jnp.float32)

    critic = SingleQCriticPallas(obs_dim, action_dim, hidden_dims,
                                 gamma=0.99, use_tanh=False, key=k_params)
    q = jax.block_until_ready(critic(obs, action))
    assert q.shape == (batch, 1)
    ref = _reference_forward(critic, obs, action)
    assert jnp.allclose(q, ref, atol=1e-2, rtol=1e-2), (q, ref)

    # `both=True` is accepted (API parity) but, as in PyTorch's SingleQCritic,
    # the forward ignores it and returns the single Q value.
    q_both = jax.block_until_ready(critic(obs, action, both=True))
    assert jnp.allclose(q_both, q)

    # use_tanh path + multi-tile padded-batch path (grid >= 2, non-divisible B).
    critic_t = SingleQCriticPallas(obs_dim, action_dim, hidden_dims,
                                   gamma=0.99, use_tanh=True, key=k_params)
    big_b = 600
    obs2 = jax.random.normal(k_obs2, (big_b, obs_dim), jnp.float32)
    act2 = jax.random.normal(k_act2, (big_b, action_dim), jnp.float32)
    q2 = jax.block_until_ready(critic_t(obs2, act2))
    assert q2.shape == (big_b, 1)
    ref2 = _reference_forward(critic_t, obs2, act2)
    assert jnp.allclose(q2, ref2, atol=1e-2, rtol=1e-2)

    # Single-hidden-layer (n_mid == 0) and no-hidden (single linear) code paths.
    critic_1h = SingleQCriticPallas(obs_dim, action_dim, (32,), key=k_params)
    q3 = jax.block_until_ready(critic_1h(obs, action))
    assert jnp.allclose(q3, _reference_forward(critic_1h, obs, action),
                        atol=1e-2, rtol=1e-2)

    critic_0h = SingleQCriticPallas(obs_dim, action_dim, (), key=k_params)
    q4 = jax.block_until_ready(critic_0h(obs, action))
    assert jnp.allclose(q4, _reference_forward(critic_0h, obs, action),
                        atol=1e-2, rtol=1e-2)

    print("KERNEL_OK")
</pallas_src>

<mosaic_0001>
module attributes {stable_mosaic.version = 11 : i64} {
  func.func @_single_q_kernel(%arg0: i32, %arg1: memref<16x12xbf16, #tpu.memory_space<vmem>>, %arg2: memref<12x128xbf16, #tpu.memory_space<vmem>>, %arg3: memref<1x128xf32, #tpu.memory_space<vmem>>, %arg4: memref<1x128x128xbf16, #tpu.memory_space<vmem>>, %arg5: memref<1x1x128xf32, #tpu.memory_space<vmem>>, %arg6: memref<128x128xbf16, #tpu.memory_space<vmem>>, %arg7: memref<1x128xf32, #tpu.memory_space<vmem>>, %arg8: memref<16x128xf32, #tpu.memory_space<vmem>>) attributes {dimension_semantics = [#tpu.dimension_semantics<parallel>], iteration_bounds = array<i64: 1>, scalar_prefetch = 0 : i64, scratch_operands = 0 : i64, tpu.core_type = #tpu.core_type<tc>, window_params = [{transform_indices = @transform_0, window_bounds = array<i64: 16, 12>}, {pipeline_mode = #tpu.pipeline_mode<synchronous>, transform_indices = @transform_1, window_bounds = array<i64: 12, 128>}, {pipeline_mode = #tpu.pipeline_mode<synchronous>, transform_indices = @transform_2, window_bounds = array<i64: 1, 128>}, {pipeline_mode = #tpu.pipeline_mode<synchronous>, transform_indices = @transform_3, window_bounds = array<i64: 1, 128, 128>}, {pipeline_mode = #tpu.pipeline_mode<synchronous>, transform_indices = @transform_4, window_bounds = array<i64: 1, 1, 128>}, {pipeline_mode = #tpu.pipeline_mode<synchronous>, transform_indices = @transform_5, window_bounds = array<i64: 128, 128>}, {pipeline_mode = #tpu.pipeline_mode<synchronous>, transform_indices = @transform_6, window_bounds = array<i64: 1, 128>}, {transform_indices = @transform_7, window_bounds = array<i64: 16, 128>}]} {
    %c0 = arith.constant 0 : index
    %c0_0 = arith.constant 0 : index
    %0 = vector.load %arg1[%c0, %c0_0] : memref<16x12xbf16, #tpu.memory_space<vmem>>, vector<16x12xbf16>
    %c0_1 = arith.constant 0 : index
    %c0_2 = arith.constant 0 : index
    %1 = vector.load %arg2[%c0_1, %c0_2] : memref<12x128xbf16, #tpu.memory_space<vmem>>, vector<12x128xbf16>
    %cst = arith.constant dense<0.000000e+00> : vector<16x128xf32>
    %2 = tpu.matmul %0, %1, %cst {dimension_numbers = #tpu.dot_dimension_numbers<[1], [0], [0], [1], [0, 0, 1, 1], [], []>} : vector<16x12xbf16>, vector<12x128xbf16>, vector<16x128xf32> -> vector<16x128xf32>
    %c0_3 = arith.constant 0 : index
    %c0_4 = arith.constant 0 : index
    %3 = vector.load %arg3[%c0_3, %c0_4] : memref<1x128xf32, #tpu.memory_space<vmem>>, vector<1x128xf32>
    %4 = vector.broadcast %3 : vector<1x128xf32> to vector<16x128xf32>
    %5 = arith.addf %2, %4 : vector<16x128xf32>
    %cst_5 = arith.constant 0.000000e+00 : f32
    %6 = vector.broadcast %cst_5 : f32 to vector<16x128xf32>
    %7 = arith.maximumf %5, %6 : vector<16x128xf32>
    %8 = arith.truncf %7 : vector<16x128xf32> to vector<16x128xbf16>
    %c0_6 = arith.constant 0 : index
    %c0_7 = arith.constant 0 : index
    %c0_8 = arith.constant 0 : index
    %9 = vector.load %arg4[%c0_6, %c0_7, %c0_8] : memref<1x128x128xbf16, #tpu.memory_space<vmem>>, vector<1x128x128xbf16>
    %10 = vector.shape_cast %9 : vector<1x128x128xbf16> to vector<128x128xbf16>
    %cst_9 = arith.constant dense<0.000000e+00> : vector<16x128xf32>
    %11 = tpu.matmul %8, %10, %cst_9 {dimension_numbers = #tpu.dot_dimension_numbers<[1], [0], [0], [1], [0, 0, 1, 1], [], []>} : vector<16x128xbf16>, vector<128x128xbf16>, vector<16x128xf32> -> vector<16x128xf32>
    %c0_10 = arith.constant 0 : index
    %c0_11 = arith.constant 0 : index
    %c0_12 = arith.constant 0 : index
    %12 = vector.load %arg5[%c0_10, %c0_11, %c0_12] : memref<1x1x128xf32, #tpu.memory_space<vmem>>, vector<1x1x128xf32>
    %13 = vector.shape_cast %12 : vector<1x1x128xf32> to vector<1x128xf32>
    %14 = vector.broadcast %13 : vector<1x128xf32> to vector<16x128xf32>
    %15 = arith.addf %11, %14 : vector<16x128xf32>
    %cst_13 = arith.constant 0.000000e+00 : f32
    %16 = vector.broadcast %cst_13 : f32 to vector<16x128xf32>
    %17 = arith.maximumf %15, %16 : vector<16x128xf32>
    %18 = arith.truncf %17 : vector<16x128xf32> to vector<16x128xbf16>
    %c0_14 = arith.constant 0 : index
    %c0_15 = arith.constant 0 : index
    %19 = vector.load %arg6[%c0_14, %c0_15] : memref<128x128xbf16, #tpu.memory_space<vmem>>, vector<128x128xbf16>
    %cst_16 = arith.constant dense<0.000000e+00> : vector<16x128xf32>
    %20 = tpu.matmul %18, %19, %cst_16 {dimension_numbers = #tpu.dot_dimension_numbers<[1], [0], [0], [1], [0, 0, 1, 1], [], []>} : vector<16x128xbf16>, vector<128x128xbf16>, vector<16x128xf32> -> vector<16x128xf32>
    %c0_17 = arith.constant 0 : index
    %c0_18 = arith.constant 0 : index
    %21 = vector.load %arg7[%c0_17, %c0_18] : memref<1x128xf32, #tpu.memory_space<vmem>>, vector<1x128xf32>
    %22 = vector.broadcast %21 : vector<1x128xf32> to vector<16x128xf32>
    %23 = arith.addf %20, %22 : vector<16x128xf32>
    %c0_19 = arith.constant 0 : index
    %c0_20 = arith.constant 0 : index
    %24 = vector.load %arg8[%c0_19, %c0_20] : memref<16x128xf32, #tpu.memory_space<vmem>>, vector<16x128xf32>
    tpu.vector_store %arg8[%c0_19, %c0_20], %23 {strides = array<i32>} : memref<16x128xf32, #tpu.memory_space<vmem>>, vector<16x128xf32>,
    return
  }
  func.func @transform_0(%arg0: i32) -> (i32, i32) {
    %c0_i32 = arith.constant 0 : i32
    %c0_i32_0 = arith.constant 0 : i32
    return %arg0, %c0_i32 : i32, i32
  }
  func.func @transform_1(%arg0: i32) -> (i32, i32) {
    %c0_i32 = arith.constant 0 : i32
    %c0_i32_0 = arith.constant 0 : i32
    %c0_i32_1 = arith.constant 0 : i32
    return %c0_i32, %c0_i32_0 : i32, i32
  }
  func.func @transform_2(%arg0: i32) -> (i32, i32) {
    %c0_i32 = arith.constant 0 : i32
    %c0_i32_0 = arith.constant 0 : i32
    %c0_i32_1 = arith.constant 0 : i32
    return %c0_i32, %c0_i32_0 : i32, i32
  }
  func.func @transform_3(%arg0: i32) -> (i32, i32, i32) {
    %c0_i32 = arith.constant 0 : i32
    %c0_i32_0 = arith.constant 0 : i32
    %c0_i32_1 = arith.constant 0 : i32
    %c0_i32_2 = arith.constant 0 : i32
    return %c0_i32, %c0_i32_0, %c0_i32_1 : i32, i32, i32
  }
  func.func @transform_4(%arg0: i32) -> (i32, i32, i32) {
    %c0_i32 = arith.constant 0 : i32
    %c0_i32_0 = arith.constant 0 : i32
    %c0_i32_1 = arith.constant 0 : i32
    %c0_i32_2 = arith.constant 0 : i32
    return %c0_i32, %c0_i32_0, %c0_i32_1 : i32, i32, i32
  }
  func.func @transform_5(%arg0: i32) -> (i32, i32) {
    %c0_i32 = arith.constant 0 : i32
    %c0_i32_0 = arith.constant 0 : i32
    %c0_i32_1 = arith.constant 0 : i32
    return %c0_i32, %c0_i32_0 : i32, i32
  }
  func.func @transform_6(%arg0: i32) -> (i32, i32) {
    %c0_i32 = arith.constant 0 : i32
    %c0_i32_0 = arith.constant 0 : i32
    %c0_i32_1 = arith.constant 0 : i32
    return %c0_i32, %c0_i32_0 : i32, i32
  }
  func.func @transform_7(%arg0: i32) -> (i32, i32) {
    %c0_i32 = arith.constant 0 : i32
    %c0_i32_0 = arith.constant 0 : i32
    return %arg0, %c0_i32 : i32, i32
  }
}

</mosaic_0001>

<bundles_post_ra>
// kernel: tpu_custom_call.1
= control target key start
LH: loop header
LB: loop body
LE: loop exit
PB: predicated region body
PF: predicated region fallthrough
CT: control target
= control target key end

     0   :  { %12 = vsyncpa [#allocation3], 0  ;;  %s808_s0 = inlined_call_operand.hbm [shape: bf16[16,12], index: 0, kind: input, shape index: {}]   ;;  %s809_s1 = inlined_call_operand.hbm [shape: bf16[12,128], index: 1, kind: input, shape index: {}]   ;;  %s810_s2 = inlined_call_operand.vmem [shape: f32[1,128], index: 2, kind: input, shape index: {}]   ;;  %s811_s3 = inlined_call_operand.hbm [shape: bf16[1,128,128], index: 3, kind: input, shape index: {}]   ;;  %s812_s4 = inlined_call_operand.vmem [shape: f32[1,1,128], index: 4, kind: input, shape index: {}]   ;;  %s813_s5 = inlined_call_operand.hbm [shape: bf16[128,128], index: 5, kind: input, shape index: {}]   ;;  %s814_s6 = inlined_call_operand.vmem [shape: f32[1,128], index: 6, kind: input, shape index: {}]   ;;  %s815_s7 = inlined_call_operand.hbm [shape: f32[16,128], index: 7, kind: output, shape index: {}]  }
   0x1   :  { %13 = vsyncpa [#allocation6], 0 }
   0x2   :  { %14 = vsyncpa [#allocation9], 0 }
   0x3   :  { %15 = vsyncpa [#allocation4], 0  ;;  %s639_s24 = smov [#allocation5]   ;;  %s640_s26 = smov [#allocation2]  }
   0x4   :  { %s33_s25 = sshll.u32 %s639_s24, 4  ;;  %s21_s27 = sshll.u32 %s640_s26, 4  ;;  %s34_s25 = int_to_ptr.vmem [resolvable:$true] %s33_s25  ;;  %s690_s27 = int_to_ptr.vmem [resolvable:$true] %s21_s27 }
   0x5   :  { %s521_s30 = scalar_lea.hbm %s809_s1, 128 }
   0x6   :  { %p522_p0 = scmp.ne.s32.totalorder %s809_s1, %s521_s30  ;;  %p525_p1 = scmp.lt.u32.totalorder %s521_s30, %s809_s1 }
   0x8   :  { %p527_p2 = pnand %p525_p1, %p522_p0 }
   0xa   :  { %530 = shalt.err (!%p527_p2)
}
   0xb   :  { %s531_s12 = scalar_lea.vmem %s34_s25, 128  ;;  %p536_p4 = scmp.lt.s32.totalorder %s34_s25, %s34_s25 }
   0xc   :  { %p532_p3 = scmp.ne.s32.totalorder %s34_s25, %s531_s12  ;;  %p537_p5 = scmp.lt.s32.totalorder %s531_s12, %s531_s12 }
   0xe   :  { %p538_p6 = por %p537_p5, %p536_p4 }
  0x10   :  { %p539_p7 = pnand %p538_p6, %p532_p3 }
  0x12   :  { %542 = shalt.err (!%p539_p7)
}
  0x13   :  { %s641_s13 = smov 64   ;;  %s642_s14 = smov 4  }
  0x14   :  { %39 = dma.hbm_to_vmem [thread:$0]  %s809_s1, 128, %s34_s25, [#allocation6], %s641_s13, %s641_s13, %s642_s14  }
  0x15   :  { %s543_s19 = scalar_lea.hbm %s808_s0, 128 }
  0x16   :  { %p544_p8 = scmp.ne.s32.totalorder %s808_s0, %s543_s19  ;;  %p547_p9 = scmp.lt.u32.totalorder %s543_s19, %s808_s0 }
  0x18   :  { %p549_p10 = pnand %p547_p9, %p544_p8 }
  0x1a   :  { %552 = shalt.err (!%p549_p10)
}
  0x1b   :  { %s553_s24 = scalar_lea.vmem %s690_s27, 128  ;;  %p558_p12 = scmp.lt.s32.totalorder %s690_s27, %s690_s27 }
  0x1c   :  { %p554_p11 = scmp.ne.s32.totalorder %s690_s27, %s553_s24  ;;  %p559_p13 = scmp.lt.s32.totalorder %s553_s24, %s553_s24 }
  0x1e   :  { %p560_p0 = por %p559_p13, %p558_p12 }
  0x20   :  { %p561_p1 = pnand %p560_p0, %p554_p11 }
  0x22   :  { %564 = shalt.err (!%p561_p1)
}
  0x23   :  { %27 = dma.hbm_to_vmem [thread:$0]  %s808_s0, 128, %s690_s27, [#allocation3], %s641_s13, %s641_s13, %s642_s14  }
  0x24   :  { %s643_s26 = smov [#allocation7]   ;;  %s644_s29 = smov [#allocation8]  }
  0x25   :  { %s47_s28 = sshll.u32 %s643_s26, 4  ;;  %s61_s30 = sshll.u32 %s644_s29, 4  ;;  %s48_s28 = int_to_ptr.vmem [resolvable:$true] %s47_s28  ;;  %s727_s30 = int_to_ptr.vmem [resolvable:$true] %s61_s30 }
  0x26   :  { %s565_s10 = scalar_lea.hbm %s811_s3, 1024 }
  0x27   :  { %p566_p2 = scmp.ne.s32.totalorder %s811_s3, %s565_s10  ;;  %p569_p3 = scmp.lt.u32.totalorder %s565_s10, %s811_s3 }
  0x29   :  { %p571_p4 = pnand %p569_p3, %p566_p2 }
  0x2b   :  { %574 = shalt.err (!%p571_p4)
}
  0x2c   :  { %s575_s0 = scalar_lea.vmem %s48_s28, 1024  ;;  %p580_p6 = scmp.lt.s32.totalorder %s48_s28, %s48_s28 }
  0x2d   :  { %p576_p5 = scmp.ne.s32.totalorder %s48_s28, %s575_s0  ;;  %p581_p7 = scmp.lt.s32.totalorder %s575_s0, %s575_s0 }
  0x2f   :  { %p582_p8 = por %p581_p7, %p580_p6 }
  0x31   :  { %p583_p9 = pnand %p582_p8, %p576_p5 }
  0x33   :  { %586 = shalt.err (!%p583_p9)
}
  0x34   :  { %53 = dma.hbm_to_vmem [thread:$0]  %s811_s3, 1024, %s48_s28, [#allocation6], %s641_s13, %s641_s13, %s642_s14  }
  0x35   :  { %s587_s20 = scalar_lea.hbm %s813_s5, 1024 }
  0x36   :  { %p588_p10 = scmp.ne.s32.totalorder %s813_s5, %s587_s20  ;;  %p591_p11 = scmp.lt.u32.totalorder %s587_s20, %s813_s5 }
  0x38   :  { %p593_p12 = pnand %p591_p11, %p588_p10 }
  0x3a   :  { %596 = shalt.err (!%p593_p12)
}
  0x3b   :  { %s597_s1 = scalar_lea.vmem %s727_s30, 1024  ;;  %p602_p0 = scmp.lt.s32.totalorder %s727_s30, %s727_s30 }
  0x3c   :  { %p598_p13 = scmp.ne.s32.totalorder %s727_s30, %s597_s1  ;;  %p603_p1 = scmp.lt.s32.totalorder %s597_s1, %s597_s1 }
  0x3e   :  { %p604_p2 = por %p603_p1, %p602_p0 }
  0x40   :  { %p605_p3 = pnand %p604_p2, %p598_p13 }
  0x42   :  { %608 = shalt.err (!%p605_p3)
}
  0x43   :  { %67 = dma.hbm_to_vmem [thread:$0]  %s813_s5, 1024, %s727_s30, [#allocation9], %s641_s13, %s641_s13, %s642_s14  }
  0x44   :  { %631 = dma.done.wait [#allocation3], 128  }
  0x45   :  { %632 = vsyncadd [#allocation3], 4294967168 }
  0x46   :  { %633 = dma.done.wait [#allocation6], 1152  }
  0x47   :  { %634 = vsyncadd [#allocation6], 4294966144 }
  0x48   :  { %635 = dma.done.wait [#allocation9], 1024  }
  0x49   :  { %636 = vsyncadd [#allocation9], 4294966272  ;;  %v645_v0 = vmov 0.0   ;;  %vm646_vm0 = vmmov 0   ;;  %vm108_vm1 = vcmask 1045504   ;;  %v504_v2 = vld [vmem:[#allocation2] sm:$0xff]  }
  0x4a   :  { %446 = vmatprep.subr.bf16.mxu0 %v645_v0  ;;  %448 = vmatprep.mubr.msk.bf16.mxu0 %vm646_vm0, %v645_v0  ;;  %v503_v1 = vld [vmem:[#allocation5] sm:$0x3f]   ;;  %v505_v4 = vld [vmem:[#allocation7] sm:$0xff]   ;;  %vm104_vm2 = vcmask 97280   ;;  %v506_v5 = vld [vmem:[#allocation7 + $0x8] sm:$0xff]   ;;  %s647_s29 = smov [#allocation10]  }
  0x4b   :  { %452 = vmatprep.subr.bf16.mxu1 %v645_v0  ;;  %468 = vmatprep.mubr.msk.bf16.mxu1 %vm646_vm0, %v645_v0  ;;  %v110_v3 = vsel %vm108_vm1, %v503_v1, 0  ;;  %v507_v6 = vld [vmem:[#allocation7 + $0x10] sm:$0xff]   ;;  %v508_v7 = vld [vmem:[#allocation7 + $0x18] sm:$0xff]   ;;  %v509_v8 = vld [vmem:[#allocation7 + $0x20] sm:$0xff]   ;;  %s390_s30 = sshll.u32 %s647_s29, 4  ;;  %s391_s30 = int_to_ptr.vmem [resolvable:$true] %s390_s30 }
  0x4c   :  { %447 = vmatpush3.bf16.msra.mxu0 %v110_v3  ;;  %453 = vmatpush3.bf16.msra.mxu1 %v505_v4  ;;  %v510_v9 = vld [vmem:[#allocation7 + $0x28] sm:$0xff]   ;;  %v511_v10 = vld [vmem:[#allocation7 + $0x30] sm:$0xff]   ;;  %v512_v11 = vld [vmem:[#allocation7 + $0x38] sm:$0xff]   ;;  %p614_p5 = scmp.lt.s32.totalorder %s391_s30, %s391_s30 }
  0x4d   :  { %472 = vmatprep.subr.bf16.mxu0 %v645_v0  ;;  %454 = vmatprep.subr.bf16.mxu1 %v645_v0  ;;  %v513_v12 = vld [vmem:[#allocation8] sm:$0xff]   ;;  %v514_v13 = vld [vmem:[#allocation8 + $0x8] sm:$0xff]   ;;  %v515_v14 = vld [vmem:[#allocation8 + $0x10] sm:$0xff]  }
  0x4e   :  { %v516_v15 = vld [vmem:[#allocation8 + $0x18] sm:$0xff]   ;;  %v517_v16 = vld [vmem:[#allocation8 + $0x20] sm:$0xff]   ;;  %v518_v17 = vld [vmem:[#allocation8 + $0x28] sm:$0xff]  }
  0x4f   :  { %449 = vmatmul.mubr.msk.bf16.vlgmr.msra.gmra.mrb[0].mxu0 %vm104_vm2, %v504_v2  ;;  %v404_v18 = vld [vmem:[%s810_s2] ss:$0 sm:$0xff]  ;;  %v520_v29 = vld [vmem:[#allocation8 + $0x38] sm:$0xff]  }
  0x50   :  { %488 = vmatprep.mubr.msk.bf16.mxu0 %vm646_vm0, %v645_v0  ;;  %455 = vmatpush3.bf16.msra.mxu1 %v506_v5  ;;  %v519_v28 = vld [vmem:[#allocation8 + $0x30] sm:$0xff]  }
  0x51   :  { %456 = vmatprep.subr.bf16.mxu1 %v645_v0  ;;  %473 = vmatpush3.bf16.msra.mxu0 %v513_v12  ;;  %v408_v30 = vld [vmem:[%s812_s4] ss:$0 sm:$0xff]  ;;  %s609_s4 = scalar_lea.vmem %s391_s30, 256 }
  0x52   :  { %474 = vmatprep.subr.bf16.mxu0 %v645_v0  ;;  %v417_v40 = vld [vmem:[%s814_s6] ss:$0 sm:$0xff]  ;;  %p610_p4 = scmp.ne.s32.totalorder %s391_s30, %s609_s4  ;;  %p615_p6 = scmp.lt.s32.totalorder %s609_s4, %s609_s4 }
  0x54   :  { %457 = vmatpush3.bf16.msra.mxu1 %v507_v6  ;;  %p616_p7 = por %p615_p6, %p614_p5 }
  0x55   :  { %458 = vmatprep.subr.bf16.mxu1 %v645_v0  ;;  %475 = vmatpush3.bf16.msra.mxu0 %v514_v13 }
  0x56   :  { %476 = vmatprep.subr.bf16.mxu0 %v645_v0  ;;  %p617_p8 = pnand %p616_p7, %p610_p4 }
  0x58   :  { %459 = vmatpush3.bf16.msra.mxu1 %v508_v7 }
  0x59   :  { %460 = vmatprep.subr.bf16.mxu1 %v645_v0  ;;  %477 = vmatpush3.bf16.msra.mxu0 %v515_v14 }
  0x5a   :  { %478 = vmatprep.subr.bf16.mxu0 %v645_v0 }
  0x5c   :  { %461 = vmatpush3.bf16.msra.mxu1 %v509_v8 }
  0x5d   :  { %462 = vmatprep.subr.bf16.mxu1 %v645_v0  ;;  %479 = vmatpush3.bf16.msra.mxu0 %v516_v15 }
  0x5e   :  { %480 = vmatprep.subr.bf16.mxu0 %v645_v0 }
  0x60   :  { %463 = vmatpush3.bf16.msra.mxu1 %v510_v9 }
  0x61   :  { %464 = vmatprep.subr.bf16.mxu1 %v645_v0  ;;  %481 = vmatpush3.bf16.msra.mxu0 %v517_v16 }
  0x62   :  { %482 = vmatprep.subr.bf16.mxu0 %v645_v0 }
  0x64   :  { %465 = vmatpush3.bf16.msra.mxu1 %v511_v10 }
  0x65   :  { %466 = vmatprep.subr.bf16.mxu1 %v645_v0  ;;  %483 = vmatpush3.bf16.msra.mxu0 %v518_v17 }
  0x66   :  { %484 = vmatprep.subr.bf16.mxu0 %v645_v0 }
  0x68   :  { %467 = vmatpush3.bf16.msra.mxu1 %v512_v11 }
  0x69   :  { %485 = vmatpush3.bf16.msra.mxu0 %v519_v28 }
  0x6a   :  { %486 = vmatprep.subr.bf16.mxu0 %v645_v0 }
  0x6d   :  { %487 = vmatpush3.bf16.msra.mxu0 %v520_v29 }
 0x122   :  { %v146_v19 = vpop.f32.mrb[0].mxu0 }
 0x123   :  { %v147_v20 = vadd.f32 %v404_v18, %v146_v19  ;;  %v450_v21 = vpop.f32.mrb[1].mxu0 }
 0x124   :  { %v149_v22 = vpop.f32.mrb[2].mxu0 }
 0x125   :  { %v150_v23 = vadd.f32 %v404_v18, %v149_v22  ;;  %v451_v24 = vpop.f32.mrb[3].mxu0  ;;  %v153_v25 = vmax.f32 %v147_v20, 0.0 }
 0x127   :  { %v154_v26 = vmax.f32 %v150_v23, 0.0 }
 0x129   :  { %v155_v27 = vpack.c.bf16 %v154_v26, %v153_v25 }
 0x12b   :  { %469 = vmatmul.mubr.bf16.vlgmr.msra.gmra.mrb[0].mxu1 %v155_v27 }
 0x1fe   :  { %v261_v31 = vpop.f32.mrb[0].mxu1 }
 0x1ff   :  { %v262_v32 = vadd.f32 %v408_v30, %v261_v31  ;;  %v470_v33 = vpop.f32.mrb[1].mxu1 }
 0x200   :  { %v264_v34 = vpop.f32.mrb[2].mxu1 }
 0x201   :  { %v265_v35 = vadd.f32 %v408_v30, %v264_v34  ;;  %v471_v36 = vpop.f32.mrb[3].mxu1  ;;  %v268_v37 = vmax.f32 %v262_v32, 0.0 }
 0x203   :  { %v269_v38 = vmax.f32 %v265_v35, 0.0 }
 0x205   :  { %v270_v39 = vpack.c.bf16 %v269_v38, %v268_v37 }
 0x207   :  { %489 = vmatmul.mubr.bf16.vlgmr.msra.gmra.mrb[4].mxu0 %v270_v39 }
 0x2da   :  { %v376_v41 = vpop.f32.mrb[4].mxu0 }
 0x2db   :  { %v377_v42 = vadd.f32 %v417_v40, %v376_v41  ;;  %v490_v43 = vpop.f32.mrb[5].mxu0 }
 0x2dc   :  { %v379_v44 = vpop.f32.mrb[6].mxu0 }
 0x2dd   :  { %383 = vst [vmem:[#allocation10] sm:$0xff] %v377_v42  ;;  %v380_v45 = vadd.f32 %v417_v40, %v379_v44  ;;  %v491_v46 = vpop.f32.mrb[7].mxu0 }
 0x2df   :  { %384 = vst [vmem:[#allocation10 + $0x8] sm:$0xff] %v380_v45 }
 0x2e0   :  { %620 = shalt.err (!%p617_p8)
}
 0x2e1   :  { %s621_s9 = scalar_lea.hbm %s815_s7, 256 }
 0x2e2   :  { %p622_p9 = scmp.ne.s32.totalorder %s815_s7, %s621_s9  ;;  %p625_p10 = scmp.lt.u32.totalorder %s621_s9, %s815_s7 }
 0x2e4   :  { %p627_p11 = pnand %p625_p10, %p622_p9 }
 0x2e6   :  { %630 = shalt.err (!%p627_p11)
}
 0x2e7   :  { %s648_s16 = smov 128   ;;  %s649_s0 = smov 8  }
 0x2e8   :  { %396 = dma.vmem_to_hbm [thread:$0]  %s391_s30, 256, %s815_s7, [#allocation4], %s648_s16, %s648_s16, %s649_s0  }
 0x2e9   :  { %637 = dma.done.wait [#allocation4], 256  }
 0x2ea   :  { %638 = vsyncadd [#allocation4], 4294967040 }
 0x2eb   :  { %400 = vsyncpa [#allocation3], 1 }
 0x2ec   :  { %401 = vsyncpa [#allocation6], 1 }
 0x2ed   :  { %402 = vsyncpa [#allocation9], 1 }
 0x2ee   :  { %403 = vsyncpa [#allocation4], 1 }

</bundles_post_ra>
